<compile_context>
chip_gen: v7x
topology: tpu7x:2x2x1
jax: 0.10.0
libtpu: 0.0.40
codegen_flags: <defaults>
</compile_context>

<pallas_src>
import functools

import jax
import jax.numpy as jnp
from jax import lax
from jax.experimental import pallas as pl
from jax.experimental.pallas import tpu as pltpu


def _round_up(x, m):
    return ((x + m - 1) // m) * m


@functools.lru_cache(maxsize=None)
def _vmem_budget_bytes():
    """Generation-aware scoped-VMEM budget (v7x: 64 MiB/TC, v5e/v6e: 128 MiB)."""
    try:
        cap = int(pltpu.get_tpu_info().vmem_capacity_bytes)
    except Exception:
        cap = 64 * 1024 * 1024          # conservative: works on every generation
    return min((cap * 7) // 8, 96 * 1024 * 1024)


def _ln_residual(x, y, gamma, beta, *, dim, eps):
    """LayerNorm of y over the true `dim` lanes + residual add with x (f32)."""
    Dp = y.shape[-1]
    padded = Dp != dim
    if padded:
        lane = lax.broadcasted_iota(jnp.int32, y.shape, 1)
        valid = lane < dim
        y = jnp.where(valid, y, 0.0)            # mask mean as well as variance
    inv_d = 1.0 / dim
    mean = jnp.sum(y, axis=-1, keepdims=True) * inv_d
    diff = y - mean
    if padded:
        diff = jnp.where(valid, diff, 0.0)
    var = jnp.sum(diff * diff, axis=-1, keepdims=True) * inv_d
    norm = diff * lax.rsqrt(var + eps)
    # Padded lanes: diff = gamma = beta = x = 0  ->  output lane stays 0.
    return x.astype(jnp.float32) + norm * gamma + beta


def _resmlp_kernel_fused(x_ref, w1_ref, b1_ref, w2_ref, b2_ref, g_ref, bt_ref,
                         o_ref, *, dim, eps):
    """Fully fused path: weights VMEM-resident, one streaming pass over x."""
    cdt = w1_ref.dtype                                   # MXU operand dtype
    x = x_ref[...]
    h = jnp.dot(x.astype(cdt), w1_ref[...], preferred_element_type=jnp.float32)
    h = jnp.maximum(h + b1_ref[...], 0.0)
    y = jnp.dot(h.astype(cdt), w2_ref[...], preferred_element_type=jnp.float32)
    y = y + b2_ref[...]
    out = _ln_residual(x, y, g_ref[...], bt_ref[...], dim=dim, eps=eps)
    o_ref[...] = out.astype(o_ref.dtype)


def _resmlp_kernel_ktiled(x_ref, w1_ref, b1_ref, w2_ref, b2_ref, g_ref, bt_ref,
                          o_ref, acc_ref, *, dim, eps):
    """K-tiled path: stream w1 column-chunks / w2 row-chunks, accumulate y."""
    cdt = w1_ref.dtype
    k = pl.program_id(1)

    @pl.when(k == 0)
    def _():
        acc_ref[...] = jnp.zeros_like(acc_ref)

    x = x_ref[...]
    h = jnp.dot(x.astype(cdt), w1_ref[...], preferred_element_type=jnp.float32)
    h = jnp.maximum(h + b1_ref[...], 0.0)                # ReLU is per hidden unit
    acc_ref[...] += jnp.dot(h.astype(cdt), w2_ref[...],
                            preferred_element_type=jnp.float32)

    @pl.when(k == pl.num_programs(1) - 1)
    def _():
        y = acc_ref[...] + b2_ref[...]
        out = _ln_residual(x, y, g_ref[...], bt_ref[...], dim=dim, eps=eps)
        o_ref[...] = out.astype(o_ref.dtype)


@functools.partial(jax.jit, static_argnames=("dim", "eps", "single_buffer"))
def resmlp_pallas(x2d, w1p, b1p, w2p, b2p, gp, btp, *, dim, eps=1e-5,
                  single_buffer=True):
    """x2d: (M, dim). w1p: (Dp, Hp), w2p: (Hp, Dp) pre-padded/cast. -> (M, dim)."""
    M, d_in = x2d.shape
    Dp, Hp = w1p.shape
    x_bytes = jnp.dtype(x2d.dtype).itemsize
    w_bytes = jnp.dtype(w1p.dtype).itemsize

    budget = _vmem_budget_bytes()
    work = (budget * 9) // 10

    # --- K (bottleneck) tiling: keep both weight blocks inside half the budget.
    num_k, tk = 1, Hp
    if 2 * Dp * Hp * w_bytes > work // 2:
        for n in range(2, Hp // 128 + 1):
            if Hp % n or (Hp // n) % 128:
                continue
            if 2 * 2 * Dp * (Hp // n) * w_bytes <= work // 2:   # double-buffered
                num_k, tk = n, Hp // n
                break
        else:
            num_k, tk = Hp // 128, 128
    w_bufs = 1 if (num_k == 1 and single_buffer) else 2
    weight_vmem = w_bufs * 2 * Dp * tk * w_bytes
    small_vmem = 4 * (2 * Hp + 6 * Dp)

    # --- Row tile: >= ~8 grid steps when M allows (megacore + pipelining),
    #     tm in the 256-512 sweet spot, capped by the scoped-VMEM budget.
    tm = _round_up(min(M, 512), 8)
    if M > 512:
        tm = min(512, max(256, _round_up(pl.cdiv(M, 8), 8)))

    def vmem_need(t):
        stream = 2 * 2 * t * Dp * x_bytes              # x + out, double-buffered
        acc = t * Dp * 4 if num_k > 1 else 0
        return stream + acc + weight_vmem + small_vmem

    while tm > 8 and vmem_need(tm) > work:
        tm = max(8, _round_up(tm // 2, 8))

    num_tiles = pl.cdiv(M, tm)
    Mp = num_tiles * tm

    # Pad rows / lanes only when actually needed (padded weight lanes are zero,
    # so padded output lanes come out exactly 0 and are sliced off below).
    needs_pad = (Mp != M) or (Dp != d_in)
    xp = jnp.pad(x2d, ((0, Mp - M), (0, Dp - d_in))) if needs_pad else x2d

    need = vmem_need(tm)
    vmem_limit = (int(min(budget, max(need + need // 4, 32 * 1024 * 1024)))
                  if need > 16 * 1024 * 1024 else None)

    cost = pl.CostEstimate(
        flops=4 * M * Dp * Hp + 10 * M * Dp,
        transcendentals=M,
        bytes_accessed=2 * M * Dp * x_bytes + 2 * Dp * Hp * w_bytes,
    )

    resident = dict(pipeline_mode=pl.Buffered(1)) if single_buffer else {}

    if num_k == 1:
        grid = (num_tiles,)
        in_specs = [
            pl.BlockSpec((tm, Dp), lambda i: (i, 0)),                 # x (streamed)
            pl.BlockSpec((Dp, Hp), lambda i: (0, 0), **resident),     # w1 (resident)
            pl.BlockSpec((1, Hp), lambda i: (0, 0), **resident),      # b1
            pl.BlockSpec((Hp, Dp), lambda i: (0, 0), **resident),     # w2 (resident)
            pl.BlockSpec((1, Dp), lambda i: (0, 0), **resident),      # b2
            pl.BlockSpec((1, Dp), lambda i: (0, 0), **resident),      # gamma
            pl.BlockSpec((1, Dp), lambda i: (0, 0), **resident),      # beta
        ]
        out_specs = pl.BlockSpec((tm, Dp), lambda i: (i, 0))
        scratch_shapes = ()
        kernel = functools.partial(_resmlp_kernel_fused, dim=dim, eps=eps)
        dims = ("parallel",)
    else:
        grid = (num_tiles, num_k)
        in_specs = [
            pl.BlockSpec((tm, Dp), lambda i, k: (i, 0)),              # x (resident over k)
            pl.BlockSpec((Dp, tk), lambda i, k: (0, k)),              # w1 chunk (streamed)
            pl.BlockSpec((1, tk), lambda i, k: (0, k)),               # b1 chunk
            pl.BlockSpec((tk, Dp), lambda i, k: (k, 0)),              # w2 chunk (streamed)
            pl.BlockSpec((1, Dp), lambda i, k: (0, 0), **resident),   # b2
            pl.BlockSpec((1, Dp), lambda i, k: (0, 0), **resident),   # gamma
            pl.BlockSpec((1, Dp), lambda i, k: (0, 0), **resident),   # beta
        ]
        out_specs = pl.BlockSpec((tm, Dp), lambda i, k: (i, 0))
        scratch_shapes = (pltpu.VMEM((tm, Dp), jnp.float32),)
        kernel = functools.partial(_resmlp_kernel_ktiled, dim=dim, eps=eps)
        dims = ("parallel", "arbitrary")

    out = pl.pallas_call(
        kernel,
        out_shape=jax.ShapeDtypeStruct((Mp, Dp), x2d.dtype),
        grid_spec=pltpu.PrefetchScalarGridSpec(
            num_scalar_prefetch=0,
            grid=grid,
            in_specs=in_specs,
            out_specs=out_specs,
            scratch_shapes=scratch_shapes,
        ),
        compiler_params=pltpu.CompilerParams(
            dimension_semantics=dims,
            vmem_limit_bytes=vmem_limit,
        ),
        cost_estimate=cost,
    )(xp, w1p, b1p, w2p, b2p, gp, btp)

    if needs_pad:
        out = out[:M, :d_in]
    return out


class ResMLP:
    """JAX/Pallas port of the PyTorch ResMLP(dim) module."""

    def __init__(self, dim, key=None, compute_dtype=jnp.float32):
        if key is None:
            key = jax.random.PRNGKey(42)
        self.dim = dim
        self.bn_dim = dim // 2
        self.eps = 1e-5
        self.compute_dtype = compute_dtype
        k1, k2, k3, k4 = jax.random.split(key, 4)
        # torch.nn.Linear default init: U(-1/sqrt(fan_in), 1/sqrt(fan_in)).
        # Weights stored (in_features, out_features) so the kernel does x @ W.
        bd1 = 1.0 / (dim ** 0.5)
        bd2 = 1.0 / (self.bn_dim ** 0.5)
        self.w1 = jax.random.uniform(k1, (dim, self.bn_dim), jnp.float32, -bd1, bd1)
        self.b1 = jax.random.uniform(k2, (self.bn_dim,), jnp.float32, -bd1, bd1)
        self.w2 = jax.random.uniform(k3, (self.bn_dim, dim), jnp.float32, -bd2, bd2)
        self.b2 = jax.random.uniform(k4, (dim,), jnp.float32, -bd2, bd2)
        # nn.LayerNorm defaults: weight = 1, bias = 0.
        self.gamma = jnp.ones((dim,), jnp.float32)
        self.beta = jnp.zeros((dim,), jnp.float32)
        self._single_buffer = True
        self._pack_params()

    def _pack_params(self):
        """Pad weights to lane-dense (multiple-of-128) shapes and cast ONCE."""
        dim, bn = self.dim, self.bn_dim
        Dp, Hp = _round_up(dim, 128), _round_up(bn, 128)
        cdt = self.compute_dtype
        self.w1p = jnp.zeros((Dp, Hp), cdt).at[:dim, :bn].set(self.w1.astype(cdt))
        self.w2p = jnp.zeros((Hp, Dp), cdt).at[:bn, :dim].set(self.w2.astype(cdt))
        # Elementwise path stays f32 (v5e has no bf16 VPU/EUP datapath).
        self.b1p = jnp.zeros((1, Hp), jnp.float32).at[0, :bn].set(self.b1.astype(jnp.float32))
        self.b2p = jnp.zeros((1, Dp), jnp.float32).at[0, :dim].set(self.b2.astype(jnp.float32))
        self.gp = jnp.zeros((1, Dp), jnp.float32).at[0, :dim].set(self.gamma.astype(jnp.float32))
        self.btp = jnp.zeros((1, Dp), jnp.float32).at[0, :dim].set(self.beta.astype(jnp.float32))

    def _forward(self, x2d, single_buffer):
        return resmlp_pallas(x2d, self.w1p, self.b1p, self.w2p, self.b2p,
                             self.gp, self.btp, dim=self.dim, eps=self.eps,
                             single_buffer=single_buffer)

    def __call__(self, x):
        lead = x.shape[:-1]
        x2d = x.reshape(-1, self.dim)
        try:
            out2d = self._forward(x2d, self._single_buffer)
        except Exception:
            if not self._single_buffer:
                raise
            # Fallback if this jax build rejects pl.Buffered(1) single-buffering.
            self._single_buffer = False
            out2d = self._forward(x2d, False)
        return out2d.reshape(*lead, self.dim)


if __name__ == "__main__":
    key = jax.random.PRNGKey(0)
    B, S, DIM = 2, 8, 32          # batch=2, seq=8, hidden dim=32 (bn_dim=16)
    x = jax.random.normal(key, (B, S, DIM), jnp.float32)

    module = ResMLP(DIM)
    out = jax.block_until_ready(module(x))

    # Pure-JAX reference (PyTorch LayerNorm semantics: biased var, eps=1e-5).
    def ref_fn(xin):
        h = jnp.maximum(xin @ module.w1 + module.b1, 0.0)
        y = h @ module.w2 + module.b2
        mu = y.mean(-1, keepdims=True)
        var = ((y - mu) ** 2).mean(-1, keepdims=True)
        ln = (y - mu) / jnp.sqrt(var + module.eps) * module.gamma + module.beta
        return xin + ln

    ref = ref_fn(x)
    assert out.shape == (B, S, DIM)
    assert bool(jnp.all(jnp.isfinite(out)))
    assert jnp.allclose(out, ref, atol=1e-4, rtol=1e-4), \
        float(jnp.max(jnp.abs(out - ref)))

    # bf16 MXU-operand variant (review item): bf16 weights / matmul operands,
    # f32 accumulation, f32 elementwise + residual path.  Loose tolerance.
    module_bf16 = ResMLP(DIM, compute_dtype=jnp.bfloat16)
    module_bf16.w1, module_bf16.b1 = module.w1, module.b1
    module_bf16.w2, module_bf16.b2 = module.w2, module.b2
    module_bf16._pack_params()
    out_bf16 = jax.block_until_ready(module_bf16(x))
    assert float(jnp.max(jnp.abs(out_bf16 - ref))) < 0.25

    print("KERNEL_OK")
</pallas_src>

<mosaic_0001>
module attributes {stable_mosaic.version = 11 : i64} {
  func.func @_resmlp_kernel_fused(%arg0: i32, %arg1: memref<16x128xf32, #tpu.memory_space<vmem>>, %arg2: memref<128x128xf32, #tpu.memory_space<vmem>>, %arg3: memref<1x128xf32, #tpu.memory_space<vmem>>, %arg4: memref<128x128xf32, #tpu.memory_space<vmem>>, %arg5: memref<1x128xf32, #tpu.memory_space<vmem>>, %arg6: memref<1x128xf32, #tpu.memory_space<vmem>>, %arg7: memref<1x128xf32, #tpu.memory_space<vmem>>, %arg8: memref<16x128xf32, #tpu.memory_space<vmem>>) attributes {dimension_semantics = [#tpu.dimension_semantics<parallel>], iteration_bounds = array<i64: 1>, scalar_prefetch = 0 : i64, scratch_operands = 0 : i64, tpu.core_type = #tpu.core_type<tc>, window_params = [{transform_indices = @transform_0, window_bounds = array<i64: 16, 128>}, {pipeline_mode = #tpu.pipeline_mode<synchronous>, transform_indices = @transform_1, window_bounds = array<i64: 128, 128>}, {pipeline_mode = #tpu.pipeline_mode<synchronous>, transform_indices = @transform_2, window_bounds = array<i64: 1, 128>}, {pipeline_mode = #tpu.pipeline_mode<synchronous>, transform_indices = @transform_3, window_bounds = array<i64: 128, 128>}, {pipeline_mode = #tpu.pipeline_mode<synchronous>, transform_indices = @transform_4, window_bounds = array<i64: 1, 128>}, {pipeline_mode = #tpu.pipeline_mode<synchronous>, transform_indices = @transform_5, window_bounds = array<i64: 1, 128>}, {pipeline_mode = #tpu.pipeline_mode<synchronous>, transform_indices = @transform_6, window_bounds = array<i64: 1, 128>}, {transform_indices = @transform_7, window_bounds = array<i64: 16, 128>}]} {
    %c0 = arith.constant 0 : index
    %c0_0 = arith.constant 0 : index
    %0 = vector.load %arg1[%c0, %c0_0] : memref<16x128xf32, #tpu.memory_space<vmem>>, vector<16x128xf32>
    %c0_1 = arith.constant 0 : index
    %c0_2 = arith.constant 0 : index
    %1 = vector.load %arg2[%c0_1, %c0_2] : memref<128x128xf32, #tpu.memory_space<vmem>>, vector<128x128xf32>
    %cst = arith.constant dense<0.000000e+00> : vector<16x128xf32>
    %2 = tpu.matmul %0, %1, %cst {dimension_numbers = #tpu.dot_dimension_numbers<[1], [0], [0], [1], [0, 0, 1, 1], [], []>} : vector<16x128xf32>, vector<128x128xf32>, vector<16x128xf32> -> vector<16x128xf32>
    %c0_3 = arith.constant 0 : index
    %c0_4 = arith.constant 0 : index
    %3 = vector.load %arg3[%c0_3, %c0_4] : memref<1x128xf32, #tpu.memory_space<vmem>>, vector<1x128xf32>
    %4 = vector.broadcast %3 : vector<1x128xf32> to vector<16x128xf32>
    %5 = arith.addf %2, %4 : vector<16x128xf32>
    %cst_5 = arith.constant 0.000000e+00 : f32
    %6 = vector.broadcast %cst_5 : f32 to vector<16x128xf32>
    %7 = arith.maximumf %5, %6 : vector<16x128xf32>
    %c0_6 = arith.constant 0 : index
    %c0_7 = arith.constant 0 : index
    %8 = vector.load %arg4[%c0_6, %c0_7] : memref<128x128xf32, #tpu.memory_space<vmem>>, vector<128x128xf32>
    %cst_8 = arith.constant dense<0.000000e+00> : vector<16x128xf32>
    %9 = tpu.matmul %7, %8, %cst_8 {dimension_numbers = #tpu.dot_dimension_numbers<[1], [0], [0], [1], [0, 0, 1, 1], [], []>} : vector<16x128xf32>, vector<128x128xf32>, vector<16x128xf32> -> vector<16x128xf32>
    %c0_9 = arith.constant 0 : index
    %c0_10 = arith.constant 0 : index
    %10 = vector.load %arg5[%c0_9, %c0_10] : memref<1x128xf32, #tpu.memory_space<vmem>>, vector<1x128xf32>
    %11 = vector.broadcast %10 : vector<1x128xf32> to vector<16x128xf32>
    %12 = arith.addf %9, %11 : vector<16x128xf32>
    %c0_11 = arith.constant 0 : index
    %c0_12 = arith.constant 0 : index
    %13 = vector.load %arg6[%c0_11, %c0_12] : memref<1x128xf32, #tpu.memory_space<vmem>>, vector<1x128xf32>
    %c0_13 = arith.constant 0 : index
    %c0_14 = arith.constant 0 : index
    %14 = vector.load %arg7[%c0_13, %c0_14] : memref<1x128xf32, #tpu.memory_space<vmem>>, vector<1x128xf32>
    %15 = tpu.iota {dimensions = array<i32: 1>} : vector<16x128xi32>
    %c32_i32 = arith.constant 32 : i32
    %16 = vector.broadcast %c32_i32 : i32 to vector<16x128xi32>
    %17 = arith.cmpi slt, %15, %16 : vector<16x128xi32>
    %cst_15 = arith.constant 0.000000e+00 : f32
    %18 = vector.broadcast %cst_15 : f32 to vector<16x128xf32>
    %19 = arith.select %17, %12, %18 : vector<16x128xi1>, vector<16x128xf32>
    %cst_16 = arith.constant dense<0.000000e+00> : vector<16xf32>
    %20 = vector.multi_reduction <add>, %19, %cst_16 [1] : vector<16x128xf32> to vector<16xf32>
    %21 = vector.shape_cast %20 : vector<16xf32> to vector<16x1xf32>
    %cst_17 = arith.constant 3.125000e-02 : f32
    %22 = vector.broadcast %cst_17 : f32 to vector<16x1xf32>
    %23 = arith.mulf %21, %22 : vector<16x1xf32>
    %24 = vector.broadcast %23 : vector<16x1xf32> to vector<16x128xf32>
    %25 = arith.subf %19, %24 : vector<16x128xf32>
    %cst_18 = arith.constant 0.000000e+00 : f32
    %26 = vector.broadcast %cst_18 : f32 to vector<16x128xf32>
    %27 = arith.select %17, %25, %26 : vector<16x128xi1>, vector<16x128xf32>
    %28 = arith.mulf %27, %27 : vector<16x128xf32>
    %cst_19 = arith.constant dense<0.000000e+00> : vector<16xf32>
    %29 = vector.multi_reduction <add>, %28, %cst_19 [1] : vector<16x128xf32> to vector<16xf32>
    %30 = vector.shape_cast %29 : vector<16xf32> to vector<16x1xf32>
    %cst_20 = arith.constant 3.125000e-02 : f32
    %31 = vector.broadcast %cst_20 : f32 to vector<16x1xf32>
    %32 = arith.mulf %30, %31 : vector<16x1xf32>
    %cst_21 = arith.constant 9.99999974E-6 : f32
    %33 = vector.broadcast %cst_21 : f32 to vector<16x1xf32>
    %34 = arith.addf %32, %33 : vector<16x1xf32>
    %35 = math.rsqrt %34 : vector<16x1xf32>
    %36 = vector.broadcast %35 : vector<16x1xf32> to vector<16x128xf32>
    %37 = arith.mulf %27, %36 : vector<16x128xf32>
    %38 = vector.broadcast %13 : vector<1x128xf32> to vector<16x128xf32>
    %39 = arith.mulf %37, %38 : vector<16x128xf32>
    %40 = arith.addf %0, %39 : vector<16x128xf32>
    %41 = vector.broadcast %14 : vector<1x128xf32> to vector<16x128xf32>
    %42 = arith.addf %40, %41 : vector<16x128xf32>
    %c0_22 = arith.constant 0 : index
    %c0_23 = arith.constant 0 : index
    %43 = vector.load %arg8[%c0_22, %c0_23] : memref<16x128xf32, #tpu.memory_space<vmem>>, vector<16x128xf32>
    tpu.vector_store %arg8[%c0_22, %c0_23], %42 {strides = array<i32>} : memref<16x128xf32, #tpu.memory_space<vmem>>, vector<16x128xf32>,
    return
  }
  func.func @transform_0(%arg0: i32) -> (i32, i32) {
    %c0_i32 = arith.constant 0 : i32
    %c0_i32_0 = arith.constant 0 : i32
    return %arg0, %c0_i32 : i32, i32
  }
  func.func @transform_1(%arg0: i32) -> (i32, i32) {
    %c0_i32 = arith.constant 0 : i32
    %c0_i32_0 = arith.constant 0 : i32
    %c0_i32_1 = arith.constant 0 : i32
    return %c0_i32, %c0_i32_0 : i32, i32
  }
  func.func @transform_2(%arg0: i32) -> (i32, i32) {
    %c0_i32 = arith.constant 0 : i32
    %c0_i32_0 = arith.constant 0 : i32
    %c0_i32_1 = arith.constant 0 : i32
    return %c0_i32, %c0_i32_0 : i32, i32
  }
  func.func @transform_3(%arg0: i32) -> (i32, i32) {
    %c0_i32 = arith.constant 0 : i32
    %c0_i32_0 = arith.constant 0 : i32
    %c0_i32_1 = arith.constant 0 : i32
    return %c0_i32, %c0_i32_0 : i32, i32
  }
  func.func @transform_4(%arg0: i32) -> (i32, i32) {
    %c0_i32 = arith.constant 0 : i32
    %c0_i32_0 = arith.constant 0 : i32
    %c0_i32_1 = arith.constant 0 : i32
    return %c0_i32, %c0_i32_0 : i32, i32
  }
  func.func @transform_5(%arg0: i32) -> (i32, i32) {
    %c0_i32 = arith.constant 0 : i32
    %c0_i32_0 = arith.constant 0 : i32
    %c0_i32_1 = arith.constant 0 : i32
    return %c0_i32, %c0_i32_0 : i32, i32
  }
  func.func @transform_6(%arg0: i32) -> (i32, i32) {
    %c0_i32 = arith.constant 0 : i32
    %c0_i32_0 = arith.constant 0 : i32
    %c0_i32_1 = arith.constant 0 : i32
    return %c0_i32, %c0_i32_0 : i32, i32
  }
  func.func @transform_7(%arg0: i32) -> (i32, i32) {
    %c0_i32 = arith.constant 0 : i32
    %c0_i32_0 = arith.constant 0 : i32
    return %arg0, %c0_i32 : i32, i32
  }
}

module attributes {stable_mosaic.version = 11 : i64} {
  func.func @_resmlp_kernel_fused(%arg0: i32, %arg1: memref<16x128xf32, #tpu.memory_space<vmem>>, %arg2: memref<128x128xf32, #tpu.memory_space<vmem>>, %arg3: memref<1x128xf32, #tpu.memory_space<vmem>>, %arg4: memref<128x128xf32, #tpu.memory_space<vmem>>, %arg5: memref<1x128xf32, #tpu.memory_space<vmem>>, %arg6: memref<1x128xf32, #tpu.memory_space<vmem>>, %arg7: memref<1x128xf32, #tpu.memory_space<vmem>>, %arg8: memref<16x128xf32, #tpu.memory_space<vmem>>) attributes {dimension_semantics = [#tpu.dimension_semantics<parallel>], iteration_bounds = array<i64: 1>, scalar_prefetch = 0 : i64, scratch_operands = 0 : i64, tpu.core_type = #tpu.core_type<tc>, window_params = [{transform_indices = @transform_0, window_bounds = array<i64: 16, 128>}, {pipeline_mode = #tpu.pipeline_mode<synchronous>, transform_indices = @transform_1, window_bounds = array<i64: 128, 128>}, {pipeline_mode = #tpu.pipeline_mode<synchronous>, transform_indices = @transform_2, window_bounds = array<i64: 1, 128>}, {pipeline_mode = #tpu.pipeline_mode<synchronous>, transform_indices = @transform_3, window_bounds = array<i64: 128, 128>}, {pipeline_mode = #tpu.pipeline_mode<synchronous>, transform_indices = @transform_4, window_bounds = array<i64: 1, 128>}, {pipeline_mode = #tpu.pipeline_mode<synchronous>, transform_indices = @transform_5, window_bounds = array<i64: 1, 128>}, {pipeline_mode = #tpu.pipeline_mode<synchronous>, transform_indices = @transform_6, window_bounds = array<i64: 1, 128>}, {transform_indices = @transform_7, window_bounds = array<i64: 16, 128>}]} {
    %c0 = arith.constant 0 : index
    %c0_0 = arith.constant 0 : index
    %0 = vector.load %arg1[%c0, %c0_0] : memref<16x128xf32, #tpu.memory_space<vmem>>, vector<16x128xf32>
    %c0_1 = arith.constant 0 : index
    %c0_2 = arith.constant 0 : index
    %1 = vector.load %arg2[%c0_1, %c0_2] : memref<128x128xf32, #tpu.memory_space<vmem>>, vector<128x128xf32>
    %cst = arith.constant dense<0.000000e+00> : vector<16x128xf32>
    %2 = tpu.matmul %0, %1, %cst {dimension_numbers = #tpu.dot_dimension_numbers<[1], [0], [0], [1], [0, 0, 1, 1], [], []>} : vector<16x128xf32>, vector<128x128xf32>, vector<16x128xf32> -> vector<16x128xf32>
    %c0_3 = arith.constant 0 : index
    %c0_4 = arith.constant 0 : index
    %3 = vector.load %arg3[%c0_3, %c0_4] : memref<1x128xf32, #tpu.memory_space<vmem>>, vector<1x128xf32>
    %4 = vector.broadcast %3 : vector<1x128xf32> to vector<16x128xf32>
    %5 = arith.addf %2, %4 : vector<16x128xf32>
    %cst_5 = arith.constant 0.000000e+00 : f32
    %6 = vector.broadcast %cst_5 : f32 to vector<16x128xf32>
    %7 = arith.maximumf %5, %6 : vector<16x128xf32>
    %c0_6 = arith.constant 0 : index
    %c0_7 = arith.constant 0 : index
    %8 = vector.load %arg4[%c0_6, %c0_7] : memref<128x128xf32, #tpu.memory_space<vmem>>, vector<128x128xf32>
    %cst_8 = arith.constant dense<0.000000e+00> : vector<16x128xf32>
    %9 = tpu.matmul %7, %8, %cst_8 {dimension_numbers = #tpu.dot_dimension_numbers<[1], [0], [0], [1], [0, 0, 1, 1], [], []>} : vector<16x128xf32>, vector<128x128xf32>, vector<16x128xf32> -> vector<16x128xf32>
    %c0_9 = arith.constant 0 : index
    %c0_10 = arith.constant 0 : index
    %10 = vector.load %arg5[%c0_9, %c0_10] : memref<1x128xf32, #tpu.memory_space<vmem>>, vector<1x128xf32>
    %11 = vector.broadcast %10 : vector<1x128xf32> to vector<16x128xf32>
    %12 = arith.addf %9, %11 : vector<16x128xf32>
    %c0_11 = arith.constant 0 : index
    %c0_12 = arith.constant 0 : index
    %13 = vector.load %arg6[%c0_11, %c0_12] : memref<1x128xf32, #tpu.memory_space<vmem>>, vector<1x128xf32>
    %c0_13 = arith.constant 0 : index
    %c0_14 = arith.constant 0 : index
    %14 = vector.load %arg7[%c0_13, %c0_14] : memref<1x128xf32, #tpu.memory_space<vmem>>, vector<1x128xf32>
    %15 = tpu.iota {dimensions = array<i32: 1>} : vector<16x128xi32>
    %c32_i32 = arith.constant 32 : i32
    %16 = vector.broadcast %c32_i32 : i32 to vector<16x128xi32>
    %17 = arith.cmpi slt, %15, %16 : vector<16x128xi32>
    %cst_15 = arith.constant 0.000000e+00 : f32
    %18 = vector.broadcast %cst_15 : f32 to vector<16x128xf32>
    %19 = arith.select %17, %12, %18 : vector<16x128xi1>, vector<16x128xf32>
    %cst_16 = arith.constant dense<0.000000e+00> : vector<16xf32>
    %20 = vector.multi_reduction <add>, %19, %cst_16 [1] : vector<16x128xf32> to vector<16xf32>
    %21 = vector.shape_cast %20 : vector<16xf32> to vector<16x1xf32>
    %cst_17 = arith.constant 3.125000e-02 : f32
    %22 = vector.broadcast %cst_17 : f32 to vector<16x1xf32>
    %23 = arith.mulf %21, %22 : vector<16x1xf32>
    %24 = vector.broadcast %23 : vector<16x1xf32> to vector<16x128xf32>
    %25 = arith.subf %19, %24 : vector<16x128xf32>
    %cst_18 = arith.constant 0.000000e+00 : f32
    %26 = vector.broadcast %cst_18 : f32 to vector<16x128xf32>
    %27 = arith.select %17, %25, %26 : vector<16x128xi1>, vector<16x128xf32>
    %28 = arith.mulf %27, %27 : vector<16x128xf32>
    %cst_19 = arith.constant dense<0.000000e+00> : vector<16xf32>
    %29 = vector.multi_reduction <add>, %28, %cst_19 [1] : vector<16x128xf32> to vector<16xf32>
    %30 = vector.shape_cast %29 : vector<16xf32> to vector<16x1xf32>
    %cst_20 = arith.constant 3.125000e-02 : f32
    %31 = vector.broadcast %cst_20 : f32 to vector<16x1xf32>
    %32 = arith.mulf %30, %31 : vector<16x1xf32>
    %cst_21 = arith.constant 9.99999974E-6 : f32
    %33 = vector.broadcast %cst_21 : f32 to vector<16x1xf32>
    %34 = arith.addf %32, %33 : vector<16x1xf32>
    %35 = math.rsqrt %34 : vector<16x1xf32>
    %36 = vector.broadcast %35 : vector<16x1xf32> to vector<16x128xf32>
    %37 = arith.mulf %27, %36 : vector<16x128xf32>
    %38 = vector.broadcast %13 : vector<1x128xf32> to vector<16x128xf32>
    %39 = arith.mulf %37, %38 : vector<16x128xf32>
    %40 = arith.addf %0, %39 : vector<16x128xf32>
    %41 = vector.broadcast %14 : vector<1x128xf32> to vector<16x128xf32>
    %42 = arith.addf %40, %41 : vector<16x128xf32>
    %c0_22 = arith.constant 0 : index
    %c0_23 = arith.constant 0 : index
    %43 = vector.load %arg8[%c0_22, %c0_23] : memref<16x128xf32, #tpu.memory_space<vmem>>, vector<16x128xf32>
    tpu.vector_store %arg8[%c0_22, %c0_23], %42 {strides = array<i32>} : memref<16x128xf32, #tpu.memory_space<vmem>>, vector<16x128xf32>,
    return
  }
  func.func @transform_0(%arg0: i32) -> (i32, i32) {
    %c0_i32 = arith.constant 0 : i32
    %c0_i32_0 = arith.constant 0 : i32
    return %arg0, %c0_i32 : i32, i32
  }
  func.func @transform_1(%arg0: i32) -> (i32, i32) {
    %c0_i32 = arith.constant 0 : i32
    %c0_i32_0 = arith.constant 0 : i32
    %c0_i32_1 = arith.constant 0 : i32
    return %c0_i32, %c0_i32_0 : i32, i32
  }
  func.func @transform_2(%arg0: i32) -> (i32, i32) {
    %c0_i32 = arith.constant 0 : i32
    %c0_i32_0 = arith.constant 0 : i32
    %c0_i32_1 = arith.constant 0 : i32
    return %c0_i32, %c0_i32_0 : i32, i32
  }
  func.func @transform_3(%arg0: i32) -> (i32, i32) {
    %c0_i32 = arith.constant 0 : i32
    %c0_i32_0 = arith.constant 0 : i32
    %c0_i32_1 = arith.constant 0 : i32
    return %c0_i32, %c0_i32_0 : i32, i32
  }
  func.func @transform_4(%arg0: i32) -> (i32, i32) {
    %c0_i32 = arith.constant 0 : i32
    %c0_i32_0 = arith.constant 0 : i32
    %c0_i32_1 = arith.constant 0 : i32
    return %c0_i32, %c0_i32_0 : i32, i32
  }
  func.func @transform_5(%arg0: i32) -> (i32, i32) {
    %c0_i32 = arith.constant 0 : i32
    %c0_i32_0 = arith.constant 0 : i32
    %c0_i32_1 = arith.constant 0 : i32
    return %c0_i32, %c0_i32_0 : i32, i32
  }
  func.func @transform_6(%arg0: i32) -> (i32, i32) {
    %c0_i32 = arith.constant 0 : i32
    %c0_i32_0 = arith.constant 0 : i32
    %c0_i32_1 = arith.constant 0 : i32
    return %c0_i32, %c0_i32_0 : i32, i32
  }
  func.func @transform_7(%arg0: i32) -> (i32, i32) {
    %c0_i32 = arith.constant 0 : i32
    %c0_i32_0 = arith.constant 0 : i32
    return %arg0, %c0_i32 : i32, i32
  }
}

</mosaic_0001>

<bundles_post_ra>
// kernel: resmlp_pallas.1
= control target key start
LH: loop header
LB: loop body
LE: loop exit
PB: predicated region body
PF: predicated region fallthrough
CT: control target
= control target key end

     0   :  { %12 = vsyncpa [#allocation3], 0  ;;  %s695_s0 = inlined_call_operand.vmem [shape: f32[16,128], index: 0, kind: input, shape index: {}]   ;;  %s696_s1 = inlined_call_operand.hbm [shape: f32[128,128], index: 1, kind: input, shape index: {}]   ;;  %s697_s2 = inlined_call_operand.vmem [shape: f32[1,128], index: 2, kind: input, shape index: {}]   ;;  %s698_s3 = inlined_call_operand.hbm [shape: f32[128,128], index: 3, kind: input, shape index: {}]   ;;  %s699_s4 = inlined_call_operand.vmem [shape: f32[1,128], index: 4, kind: input, shape index: {}]   ;;  %s700_s5 = inlined_call_operand.vmem [shape: f32[1,128], index: 5, kind: input, shape index: {}]   ;;  %s701_s6 = inlined_call_operand.vmem [shape: f32[1,128], index: 6, kind: input, shape index: {}]   ;;  %s702_s7 = inlined_call_operand.hbm [shape: f32[16,128], index: 7, kind: output, shape index: {}]  }
   0x1   :  { %13 = vsyncpa [#allocation6], 0 }
   0x2   :  { %14 = vsyncpa [#allocation4], 0  ;;  %s579_s24 = smov [#allocation2]   ;;  %s507_s28 = scalar_lea.hbm %s696_s1, 2048 }
   0x3   :  { %s22_s25 = sshll.u32 %s579_s24, 4  ;;  %p508_p0 = scmp.ne.s32.totalorder %s696_s1, %s507_s28  ;;  %s23_s25 = int_to_ptr.vmem [resolvable:$true] %s22_s25 }
   0x4   :  { %p511_p1 = scmp.lt.u32.totalorder %s507_s28, %s696_s1 }
   0x6   :  { %p513_p2 = pnand %p511_p1, %p508_p0 }
   0x8   :  { %516 = shalt.err (!%p513_p2)
}
   0x9   :  { %s517_s10 = scalar_lea.vmem %s23_s25, 2048  ;;  %p522_p4 = scmp.lt.s32.totalorder %s23_s25, %s23_s25 }
   0xa   :  { %p518_p3 = scmp.ne.s32.totalorder %s23_s25, %s517_s10  ;;  %p523_p5 = scmp.lt.s32.totalorder %s517_s10, %s517_s10 }
   0xc   :  { %p524_p6 = por %p523_p5, %p522_p4 }
   0xe   :  { %p525_p7 = pnand %p524_p6, %p518_p3 }
  0x10   :  { %528 = shalt.err (!%p525_p7)
}
  0x11   :  { %s580_s11 = smov 128   ;;  %s581_s12 = smov 8  }
  0x12   :  { %28 = dma.hbm_to_vmem [thread:$0]  %s696_s1, 2048, %s23_s25, [#allocation3], %s580_s11, %s580_s11, %s581_s12  }
  0x13   :  { %s582_s15 = smov [#allocation5]   ;;  %s529_s19 = scalar_lea.hbm %s698_s3, 2048 }
  0x14   :  { %s36_s16 = sshll.u32 %s582_s15, 4  ;;  %p530_p8 = scmp.ne.s32.totalorder %s698_s3, %s529_s19  ;;  %s37_s16 = int_to_ptr.vmem [resolvable:$true] %s36_s16 }
  0x15   :  { %p533_p9 = scmp.lt.u32.totalorder %s529_s19, %s698_s3 }
  0x17   :  { %p535_p10 = pnand %p533_p9, %p530_p8 }
  0x19   :  { %538 = shalt.err (!%p535_p10)
}
  0x1a   :  { %s539_s24 = scalar_lea.vmem %s37_s16, 2048  ;;  %p544_p12 = scmp.lt.s32.totalorder %s37_s16, %s37_s16 }
  0x1b   :  { %p540_p11 = scmp.ne.s32.totalorder %s37_s16, %s539_s24  ;;  %p545_p13 = scmp.lt.s32.totalorder %s539_s24, %s539_s24 }
  0x1d   :  { %p546_p0 = por %p545_p13, %p544_p12 }
  0x1f   :  { %p547_p1 = pnand %p546_p0, %p540_p11 }
  0x21   :  { %550 = shalt.err (!%p547_p1)
}
  0x22   :  { %42 = dma.hbm_to_vmem [thread:$0]  %s698_s3, 2048, %s37_s16, [#allocation6], %s580_s11, %s580_s11, %s581_s12  }
  0x23   :  { %573 = dma.done.wait [#allocation3], 2048  }
  0x24   :  { %574 = vsyncadd [#allocation3], 4294965248 }
  0x25   :  { %575 = dma.done.wait [#allocation6], 2048  }
  0x26   :  { %576 = vsyncadd [#allocation6], 4294965248  ;;  %v57_v0 = vld [vmem:[#allocation2] sm:$0xff]  ;;  %v58_v1 = vld [vmem:[#allocation2 + $0x8] sm:$0xff]  ;;  %v257_v57 = vlaneseq  ;;  %s583_s13 = smov [#allocation7]  }
  0x27   :  { %v59_v2 = vld [vmem:[#allocation2 + $0x10] sm:$0xff]  ;;  %v434_v3 = vpack.c.bf16 %v58_v1, %v57_v0  ;;  %v60_v4 = vld [vmem:[#allocation2 + $0x18] sm:$0xff]  ;;  %v61_v6 = vld [vmem:[#allocation2 + $0x20] sm:$0xff]  ;;  %s311_s14 = sshll.u32 %s583_s13, 4  ;;  %s312_s14 = int_to_ptr.vmem [resolvable:$true] %s311_s14 }
  0x28   :  { %v438_v5 = vpack.c.bf16 %v60_v4, %v59_v2  ;;  %v62_v7 = vld [vmem:[#allocation2 + $0x28] sm:$0xff]  ;;  %v63_v9 = vld [vmem:[#allocation2 + $0x30] sm:$0xff]  ;;  %v64_v10 = vld [vmem:[#allocation2 + $0x38] sm:$0xff]  ;;  %v258_v58 = vand.u32 127, %v257_v57  ;;  %p556_p3 = scmp.lt.s32.totalorder %s312_s14, %s312_s14 }
  0x29   :  { %435 = vmatprep.subr.bf16.mxu0 %v434_v3  ;;  %v442_v8 = vpack.c.bf16 %v62_v7, %v61_v6  ;;  %v657_v11 = vld [vmem:[%s695_s0] sm:$0xff]  ;;  %v158_v13 = vld [vmem:[#allocation5 + $0x8] sm:$0xff]  ;;  %v159_v14 = vld [vmem:[#allocation5 + $0x10] sm:$0xff]  ;;  %v446_v20 = vpack.c.bf16 %v64_v10, %v63_v9 }
  0x2a   :  { %437 = vmatpush3.bf16.msra.mxu0 %v434_v3  ;;  %396 = vmatprep.mubr.f32.mxu0 %v657_v11  ;;  %v157_v12 = vld [vmem:[#allocation5] sm:$0xff]  ;;  %v160_v16 = vld [vmem:[#allocation5 + $0x18] sm:$0xff]  ;;  %v162_v19 = vld [vmem:[#allocation5 + $0x28] sm:$0xff]  ;;  %vm259_vm0 = vcmp.lt.s32.totalorder %v258_v58, 32 }
  0x2b   :  { %439 = vmatprep.subr.bf16.mxu0 %v438_v5  ;;  %v466_v15 = vpack.c.bf16 %v158_v13, %v157_v12  ;;  %v470_v17 = vpack.c.bf16 %v160_v16, %v159_v14  ;;  %v161_v18 = vld [vmem:[#allocation5 + $0x20] sm:$0xff]  ;;  %v66_v22 = vld [vmem:[#allocation2 + $0x48] sm:$0xff]  ;;  %v163_v24 = vld [vmem:[#allocation5 + $0x30] sm:$0xff] }
  0x2c   :  { %v65_v21 = vld [vmem:[#allocation2 + $0x40] sm:$0xff]  ;;  %v474_v23 = vpack.c.bf16 %v162_v19, %v161_v18  ;;  %v164_v25 = vld [vmem:[#allocation5 + $0x38] sm:$0xff]  ;;  %v67_v27 = vld [vmem:[#allocation2 + $0x50] sm:$0xff] }
  0x2d   :  { %467 = vmatprep.subr.bf16.mxu1 %v466_v15  ;;  %v450_v26 = vpack.c.bf16 %v66_v22, %v65_v21  ;;  %v68_v28 = vld [vmem:[#allocation2 + $0x58] sm:$0xff]  ;;  %v478_v29 = vpack.c.bf16 %v164_v25, %v163_v24  ;;  %v165_v30 = vld [vmem:[#allocation5 + $0x40] sm:$0xff]  ;;  %v166_v31 = vld [vmem:[#allocation5 + $0x48] sm:$0xff] }
  0x2e   :  { %441 = vmatpush3.bf16.msra.mxu0 %v438_v5  ;;  %469 = vmatpush3.bf16.msra.mxu1 %v466_v15  ;;  %v454_v32 = vpack.c.bf16 %v68_v28, %v67_v27  ;;  %v69_v33 = vld [vmem:[#allocation2 + $0x60] sm:$0xff]  ;;  %v70_v34 = vld [vmem:[#allocation2 + $0x68] sm:$0xff]  ;;  %v482_v35 = vpack.c.bf16 %v166_v31, %v165_v30  ;;  %v167_v36 = vld [vmem:[#allocation5 + $0x50] sm:$0xff] }
  0x2f   :  { %443 = vmatprep.subr.bf16.mxu0 %v442_v8  ;;  %471 = vmatprep.subr.bf16.mxu1 %v470_v17  ;;  %v168_v37 = vld [vmem:[#allocation5 + $0x58] sm:$0xff]  ;;  %v458_v38 = vpack.c.bf16 %v70_v34, %v69_v33  ;;  %v71_v39 = vld [vmem:[#allocation2 + $0x70] sm:$0xff]  ;;  %v169_v42 = vld [vmem:[#allocation5 + $0x60] sm:$0xff] }
  0x30   :  { %v72_v40 = vld [vmem:[#allocation2 + $0x78] sm:$0xff]  ;;  %v486_v41 = vpack.c.bf16 %v168_v37, %v167_v36  ;;  %v170_v43 = vld [vmem:[#allocation5 + $0x68] sm:$0xff]  ;;  %v171_v47 = vld [vmem:[#allocation5 + $0x70] sm:$0xff] }
  0x31   :  { %v462_v44 = vpack.c.bf16 %v72_v40, %v71_v39  ;;  %v490_v45 = vpack.c.bf16 %v170_v43, %v169_v42  ;;  %v56_v46 = vld [vmem:[%s695_s0 + $0x8] sm:$0xff]  ;;  %v172_v48 = vld [vmem:[#allocation5 + $0x78] sm:$0xff]  ;;  %v324_v50 = vld [vmem:[%s697_s2] ss:$0 sm:$0xff] }
  0x32   :  { %445 = vmatpush3.bf16.msra.mxu0 %v442_v8  ;;  %473 = vmatpush3.bf16.msra.mxu1 %v470_v17  ;;  %v494_v49 = vpack.c.bf16 %v172_v48, %v171_v47  ;;  %v325_v59 = vld [vmem:[%s699_s4] ss:$0 sm:$0xff] }
  0x33   :  { %447 = vmatprep.subr.bf16.mxu0 %v446_v20  ;;  %475 = vmatprep.subr.bf16.mxu1 %v474_v23  ;;  %v327_v24 = vld [vmem:[%s701_s6] ss:$0 sm:$0xff] }
  0x36   :  { %449 = vmatpush3.bf16.msra.mxu0 %v446_v20  ;;  %477 = vmatpush3.bf16.msra.mxu1 %v474_v23  ;;  %v326_v20 = vld [vmem:[%s700_s5] ss:$0 sm:$0xff]  ;;  %s551_s5 = scalar_lea.vmem %s312_s14, 256 }
  0x37   :  { %451 = vmatprep.subr.bf16.mxu0 %v450_v26  ;;  %479 = vmatprep.subr.bf16.mxu1 %v478_v29  ;;  %p552_p2 = scmp.ne.s32.totalorder %s312_s14, %s551_s5  ;;  %p557_p4 = scmp.lt.s32.totalorder %s551_s5, %s551_s5 }
  0x39   :  { %p558_p5 = por %p557_p4, %p556_p3 }
  0x3a   :  { %453 = vmatpush3.bf16.msra.mxu0 %v450_v26  ;;  %481 = vmatpush3.bf16.msra.mxu1 %v478_v29 }
  0x3b   :  { %455 = vmatprep.subr.bf16.mxu0 %v454_v32  ;;  %483 = vmatprep.subr.bf16.mxu1 %v482_v35  ;;  %p559_p6 = pnand %p558_p5, %p552_p2 }
  0x3e   :  { %457 = vmatpush3.bf16.msra.mxu0 %v454_v32  ;;  %485 = vmatpush3.bf16.msra.mxu1 %v482_v35 }
  0x3f   :  { %459 = vmatprep.subr.bf16.mxu0 %v458_v38  ;;  %487 = vmatprep.subr.bf16.mxu1 %v486_v41 }
  0x42   :  { %461 = vmatpush3.bf16.msra.mxu0 %v458_v38  ;;  %489 = vmatpush3.bf16.msra.mxu1 %v486_v41 }
  0x43   :  { %463 = vmatprep.subr.bf16.mxu0 %v462_v44  ;;  %491 = vmatprep.subr.bf16.mxu1 %v490_v45 }
  0x46   :  { %465 = vmatpush3.bf16.msra.mxu0 %v462_v44  ;;  %493 = vmatpush3.bf16.msra.mxu1 %v490_v45 }
  0x47   :  { %495 = vmatprep.subr.bf16.mxu1 %v494_v49 }
  0x49   :  { %397 = vmatmul.mubr.f32.vlgmr.msra.gmra.mrb[0].mxu0 %v56_v46 }
  0x4a   :  { %497 = vmatpush3.bf16.msra.mxu1 %v494_v49 }
 0x11c   :  { %v398_v51 = vpop.f32.mrb[0].mxu0 }
 0x11d   :  { %v152_v52 = vadd.f32 %v398_v51, %v324_v50  ;;  %v146_v53 = vpop.f32.mrb[1].mxu0 }
 0x11e   :  { %v147_v54 = vadd.f32 %v324_v50, %v146_v53 }
 0x11f   :  { %v156_v56 = vmax.f32 %v152_v52, 0.0 }
 0x120   :  { %v155_v55 = vmax.f32 %v147_v54, 0.0 }
 0x122   :  { %431 = vmatprep.mubr.f32.mxu1 %v155_v55 }
 0x123   :  { %432 = vmatmul.mubr.f32.vlgmr.msra.gmra.mrb[0].mxu1 %v156_v56 }
 0x1f6   :  { %v433_v60 = vpop.f32.mrb[0].mxu1 }
 0x1f7   :  { %v246_v61 = vpop.f32.mrb[1].mxu1  ;;  %v252_v63 = vadd.f32 %v433_v60, %v325_v59 }
 0x1f8   :  { %v247_v62 = vadd.f32 %v325_v59, %v246_v61 }
 0x1f9   :  { %v261_v1 = vsel %vm259_vm0, %v252_v63, 0.0 }
 0x1fa   :  { %v260_v0 = vsel %vm259_vm0, %v247_v62, 0.0 }
 0x1fb   :  { %262 = vadd.xlane.f32.xlu0 %v260_v0 }
 0x1ff   :  { %264 = vadd.xlane.f32.xlu0 %v261_v1 }
 0x288   :  { %v263_v2 = vpop.xlane.xlu0 %262 }
 0x289   :  { %v266_v3 = vmul.f32 0.03125, %v263_v2 }
 0x28b   :  { %v268_v4 = vsub.f32 %v260_v0, %v266_v3 }
 0x28c   :  { %v265_v5 = vpop.xlane.xlu0 %264 }
 0x28d   :  { %v267_v6 = vmul.f32 0.03125, %v265_v5  ;;  %v270_v7 = vsel %vm259_vm0, %v268_v4, 0.0 }
 0x28e   :  { %v272_v8 = vmul.f32 %v270_v7, %v270_v7 }
 0x28f   :  { %v269_v9 = vsub.f32 %v261_v1, %v267_v6 }
 0x290   :  { %274 = vadd.xlane.f32.xlu1 %v272_v8 }
 0x291   :  { %v271_v10 = vsel %vm259_vm0, %v269_v9, 0.0 }
 0x292   :  { %v273_v12 = vmul.f32 %v271_v10, %v271_v10 }
 0x294   :  { %276 = vadd.xlane.f32.xlu1 %v273_v12 }
 0x31d   :  { %v275_v13 = vpop.xlane.xlu1 %274 }
 0x31e   :  { %v278_v14 = vmul.f32 0.03125, %v275_v13 }
 0x320   :  { %v280_v15 = vadd.f32 1e-05, %v278_v14 }
 0x321   :  { %v277_v16 = vpop.xlane.xlu1 %276 }
 0x322   :  { %503 = vrsqrt.f32 %v280_v15  ;;  %v279_v17 = vmul.f32 0.03125, %v277_v16 }
 0x324   :  { %v281_v18 = vadd.f32 1e-05, %v279_v17 }
 0x326   :  { %505 = vrsqrt.f32 %v281_v18 }
 0x32c   :  { %v504_v19 = vpop.eup %503 }
 0x32d   :  { %v284_v21 = vmul.f32 %v504_v19, %v270_v7 }
 0x32f   :  { %v292_v22 = vmul.f32 %v326_v20, %v284_v21 }
 0x330   :  { %v506_v23 = vpop.eup %505 }
 0x331   :  { %v285_v25 = vmul.f32 %v506_v23, %v271_v10  ;;  %v294_v26 = vadd.f32 %v292_v22, %v657_v11 }
 0x333   :  { %v293_v27 = vmul.f32 %v326_v20, %v285_v25  ;;  %v302_v28 = vadd.f32 %v327_v24, %v294_v26 }
 0x335   :  { %v295_v29 = vadd.f32 %v293_v27, %v56_v46  ;;  %304 = vst [vmem:[#allocation7] sm:$0xff] %v302_v28 }
 0x337   :  { %v303_v30 = vadd.f32 %v327_v24, %v295_v29 }
 0x339   :  { %305 = vst [vmem:[#allocation7 + $0x8] sm:$0xff] %v303_v30 }
 0x33a   :  { %562 = shalt.err (!%p559_p6)
}
 0x33b   :  { %s563_s16 = scalar_lea.hbm %s702_s7, 256 }
 0x33c   :  { %p564_p7 = scmp.ne.s32.totalorder %s702_s7, %s563_s16  ;;  %p567_p8 = scmp.lt.u32.totalorder %s563_s16, %s702_s7 }
 0x33e   :  { %p569_p9 = pnand %p567_p8, %p564_p7 }
 0x340   :  { %572 = shalt.err (!%p569_p9)
}
 0x341   :  { %317 = dma.vmem_to_hbm [thread:$0]  %s312_s14, 256, %s702_s7, [#allocation4], %s580_s11, %s580_s11, %s581_s12  }
 0x342   :  { %577 = dma.done.wait [#allocation4], 256  }
 0x343   :  { %578 = vsyncadd [#allocation4], 4294967040 }
 0x344   :  { %321 = vsyncpa [#allocation3], 1 }
 0x345   :  { %322 = vsyncpa [#allocation6], 1 }
 0x346   :  { %323 = vsyncpa [#allocation4], 1 }

// kernel: resmlp_pallas.1
= control target key start
LH: loop header
LB: loop body
LE: loop exit
PB: predicated region body
PF: predicated region fallthrough
CT: control target
= control target key end

     0   :  { %12 = vsyncpa [#allocation3], 0  ;;  %s695_s0 = inlined_call_operand.vmem [shape: f32[16,128], index: 0, kind: input, shape index: {}]   ;;  %s696_s1 = inlined_call_operand.hbm [shape: f32[128,128], index: 1, kind: input, shape index: {}]   ;;  %s697_s2 = inlined_call_operand.vmem [shape: f32[1,128], index: 2, kind: input, shape index: {}]   ;;  %s698_s3 = inlined_call_operand.hbm [shape: f32[128,128], index: 3, kind: input, shape index: {}]   ;;  %s699_s4 = inlined_call_operand.vmem [shape: f32[1,128], index: 4, kind: input, shape index: {}]   ;;  %s700_s5 = inlined_call_operand.vmem [shape: f32[1,128], index: 5, kind: input, shape index: {}]   ;;  %s701_s6 = inlined_call_operand.vmem [shape: f32[1,128], index: 6, kind: input, shape index: {}]   ;;  %s702_s7 = inlined_call_operand.hbm [shape: f32[16,128], index: 7, kind: output, shape index: {}]  }
   0x1   :  { %13 = vsyncpa [#allocation6], 0 }
   0x2   :  { %14 = vsyncpa [#allocation4], 0  ;;  %s579_s24 = smov [#allocation2]   ;;  %s507_s28 = scalar_lea.hbm %s696_s1, 2048 }
   0x3   :  { %s22_s25 = sshll.u32 %s579_s24, 4  ;;  %p508_p0 = scmp.ne.s32.totalorder %s696_s1, %s507_s28  ;;  %s23_s25 = int_to_ptr.vmem [resolvable:$true] %s22_s25 }
   0x4   :  { %p511_p1 = scmp.lt.u32.totalorder %s507_s28, %s696_s1 }
   0x6   :  { %p513_p2 = pnand %p511_p1, %p508_p0 }
   0x8   :  { %516 = shalt.err (!%p513_p2)
}
   0x9   :  { %s517_s10 = scalar_lea.vmem %s23_s25, 2048  ;;  %p522_p4 = scmp.lt.s32.totalorder %s23_s25, %s23_s25 }
   0xa   :  { %p518_p3 = scmp.ne.s32.totalorder %s23_s25, %s517_s10  ;;  %p523_p5 = scmp.lt.s32.totalorder %s517_s10, %s517_s10 }
   0xc   :  { %p524_p6 = por %p523_p5, %p522_p4 }
   0xe   :  { %p525_p7 = pnand %p524_p6, %p518_p3 }
  0x10   :  { %528 = shalt.err (!%p525_p7)
}
  0x11   :  { %s580_s11 = smov 128   ;;  %s581_s12 = smov 8  }
  0x12   :  { %28 = dma.hbm_to_vmem [thread:$0]  %s696_s1, 2048, %s23_s25, [#allocation3], %s580_s11, %s580_s11, %s581_s12  }
  0x13   :  { %s582_s15 = smov [#allocation5]   ;;  %s529_s19 = scalar_lea.hbm %s698_s3, 2048 }
  0x14   :  { %s36_s16 = sshll.u32 %s582_s15, 4  ;;  %p530_p8 = scmp.ne.s32.totalorder %s698_s3, %s529_s19  ;;  %s37_s16 = int_to_ptr.vmem [resolvable:$true] %s36_s16 }
  0x15   :  { %p533_p9 = scmp.lt.u32.totalorder %s529_s19, %s698_s3 }
  0x17   :  { %p535_p10 = pnand %p533_p9, %p530_p8 }
  0x19   :  { %538 = shalt.err (!%p535_p10)
}
  0x1a   :  { %s539_s24 = scalar_lea.vmem %s37_s16, 2048  ;;  %p544_p12 = scmp.lt.s32.totalorder %s37_s16, %s37_s16 }
  0x1b   :  { %p540_p11 = scmp.ne.s32.totalorder %s37_s16, %s539_s24  ;;  %p545_p13 = scmp.lt.s32.totalorder %s539_s24, %s539_s24 }
  0x1d   :  { %p546_p0 = por %p545_p13, %p544_p12 }
  0x1f   :  { %p547_p1 = pnand %p546_p0, %p540_p11 }
  0x21   :  { %550 = shalt.err (!%p547_p1)
}
  0x22   :  { %42 = dma.hbm_to_vmem [thread:$0]  %s698_s3, 2048, %s37_s16, [#allocation6], %s580_s11, %s580_s11, %s581_s12  }
  0x23   :  { %573 = dma.done.wait [#allocation3], 2048  }
  0x24   :  { %574 = vsyncadd [#allocation3], 4294965248 }
  0x25   :  { %575 = dma.done.wait [#allocation6], 2048  }
  0x26   :  { %576 = vsyncadd [#allocation6], 4294965248  ;;  %v57_v0 = vld [vmem:[#allocation2] sm:$0xff]  ;;  %v58_v1 = vld [vmem:[#allocation2 + $0x8] sm:$0xff]  ;;  %v257_v57 = vlaneseq  ;;  %s583_s13 = smov [#allocation7]  }
  0x27   :  { %v59_v2 = vld [vmem:[#allocation2 + $0x10] sm:$0xff]  ;;  %v434_v3 = vpack.c.bf16 %v58_v1, %v57_v0  ;;  %v60_v4 = vld [vmem:[#allocation2 + $0x18] sm:$0xff]  ;;  %v61_v6 = vld [vmem:[#allocation2 + $0x20] sm:$0xff]  ;;  %s311_s14 = sshll.u32 %s583_s13, 4  ;;  %s312_s14 = int_to_ptr.vmem [resolvable:$true] %s311_s14 }
  0x28   :  { %v438_v5 = vpack.c.bf16 %v60_v4, %v59_v2  ;;  %v62_v7 = vld [vmem:[#allocation2 + $0x28] sm:$0xff]  ;;  %v63_v9 = vld [vmem:[#allocation2 + $0x30] sm:$0xff]  ;;  %v64_v10 = vld [vmem:[#allocation2 + $0x38] sm:$0xff]  ;;  %v258_v58 = vand.u32 127, %v257_v57  ;;  %p556_p3 = scmp.lt.s32.totalorder %s312_s14, %s312_s14 }
  0x29   :  { %435 = vmatprep.subr.bf16.mxu0 %v434_v3  ;;  %v442_v8 = vpack.c.bf16 %v62_v7, %v61_v6  ;;  %v657_v11 = vld [vmem:[%s695_s0] sm:$0xff]  ;;  %v158_v13 = vld [vmem:[#allocation5 + $0x8] sm:$0xff]  ;;  %v159_v14 = vld [vmem:[#allocation5 + $0x10] sm:$0xff]  ;;  %v446_v20 = vpack.c.bf16 %v64_v10, %v63_v9 }
  0x2a   :  { %437 = vmatpush3.bf16.msra.mxu0 %v434_v3  ;;  %396 = vmatprep.mubr.f32.mxu0 %v657_v11  ;;  %v157_v12 = vld [vmem:[#allocation5] sm:$0xff]  ;;  %v160_v16 = vld [vmem:[#allocation5 + $0x18] sm:$0xff]  ;;  %v162_v19 = vld [vmem:[#allocation5 + $0x28] sm:$0xff]  ;;  %vm259_vm0 = vcmp.lt.s32.totalorder %v258_v58, 32 }
  0x2b   :  { %439 = vmatprep.subr.bf16.mxu0 %v438_v5  ;;  %v466_v15 = vpack.c.bf16 %v158_v13, %v157_v12  ;;  %v470_v17 = vpack.c.bf16 %v160_v16, %v159_v14  ;;  %v161_v18 = vld [vmem:[#allocation5 + $0x20] sm:$0xff]  ;;  %v66_v22 = vld [vmem:[#allocation2 + $0x48] sm:$0xff]  ;;  %v163_v24 = vld [vmem:[#allocation5 + $0x30] sm:$0xff] }
  0x2c   :  { %v65_v21 = vld [vmem:[#allocation2 + $0x40] sm:$0xff]  ;;  %v474_v23 = vpack.c.bf16 %v162_v19, %v161_v18  ;;  %v164_v25 = vld [vmem:[#allocation5 + $0x38] sm:$0xff]  ;;  %v67_v27 = vld [vmem:[#allocation2 + $0x50] sm:$0xff] }
  0x2d   :  { %467 = vmatprep.subr.bf16.mxu1 %v466_v15  ;;  %v450_v26 = vpack.c.bf16 %v66_v22, %v65_v21  ;;  %v68_v28 = vld [vmem:[#allocation2 + $0x58] sm:$0xff]  ;;  %v478_v29 = vpack.c.bf16 %v164_v25, %v163_v24  ;;  %v165_v30 = vld [vmem:[#allocation5 + $0x40] sm:$0xff]  ;;  %v166_v31 = vld [vmem:[#allocation5 + $0x48] sm:$0xff] }
  0x2e   :  { %441 = vmatpush3.bf16.msra.mxu0 %v438_v5  ;;  %469 = vmatpush3.bf16.msra.mxu1 %v466_v15  ;;  %v454_v32 = vpack.c.bf16 %v68_v28, %v67_v27  ;;  %v69_v33 = vld [vmem:[#allocation2 + $0x60] sm:$0xff]  ;;  %v70_v34 = vld [vmem:[#allocation2 + $0x68] sm:$0xff]  ;;  %v482_v35 = vpack.c.bf16 %v166_v31, %v165_v30  ;;  %v167_v36 = vld [vmem:[#allocation5 + $0x50] sm:$0xff] }
  0x2f   :  { %443 = vmatprep.subr.bf16.mxu0 %v442_v8  ;;  %471 = vmatprep.subr.bf16.mxu1 %v470_v17  ;;  %v168_v37 = vld [vmem:[#allocation5 + $0x58] sm:$0xff]  ;;  %v458_v38 = vpack.c.bf16 %v70_v34, %v69_v33  ;;  %v71_v39 = vld [vmem:[#allocation2 + $0x70] sm:$0xff]  ;;  %v169_v42 = vld [vmem:[#allocation5 + $0x60] sm:$0xff] }
  0x30   :  { %v72_v40 = vld [vmem:[#allocation2 + $0x78] sm:$0xff]  ;;  %v486_v41 = vpack.c.bf16 %v168_v37, %v167_v36  ;;  %v170_v43 = vld [vmem:[#allocation5 + $0x68] sm:$0xff]  ;;  %v171_v47 = vld [vmem:[#allocation5 + $0x70] sm:$0xff] }
  0x31   :  { %v462_v44 = vpack.c.bf16 %v72_v40, %v71_v39  ;;  %v490_v45 = vpack.c.bf16 %v170_v43, %v169_v42  ;;  %v56_v46 = vld [vmem:[%s695_s0 + $0x8] sm:$0xff]  ;;  %v172_v48 = vld [vmem:[#allocation5 + $0x78] sm:$0xff]  ;;  %v324_v50 = vld [vmem:[%s697_s2] ss:$0 sm:$0xff] }
  0x32   :  { %445 = vmatpush3.bf16.msra.mxu0 %v442_v8  ;;  %473 = vmatpush3.bf16.msra.mxu1 %v470_v17  ;;  %v494_v49 = vpack.c.bf16 %v172_v48, %v171_v47  ;;  %v325_v59 = vld [vmem:[%s699_s4] ss:$0 sm:$0xff] }
  0x33   :  { %447 = vmatprep.subr.bf16.mxu0 %v446_v20  ;;  %475 = vmatprep.subr.bf16.mxu1 %v474_v23  ;;  %v327_v24 = vld [vmem:[%s701_s6] ss:$0 sm:$0xff] }
  0x36   :  { %449 = vmatpush3.bf16.msra.mxu0 %v446_v20  ;;  %477 = vmatpush3.bf16.msra.mxu1 %v474_v23  ;;  %v326_v20 = vld [vmem:[%s700_s5] ss:$0 sm:$0xff]  ;;  %s551_s5 = scalar_lea.vmem %s312_s14, 256 }
  0x37   :  { %451 = vmatprep.subr.bf16.mxu0 %v450_v26  ;;  %479 = vmatprep.subr.bf16.mxu1 %v478_v29  ;;  %p552_p2 = scmp.ne.s32.totalorder %s312_s14, %s551_s5  ;;  %p557_p4 = scmp.lt.s32.totalorder %s551_s5, %s551_s5 }
  0x39   :  { %p558_p5 = por %p557_p4, %p556_p3 }
  0x3a   :  { %453 = vmatpush3.bf16.msra.mxu0 %v450_v26  ;;  %481 = vmatpush3.bf16.msra.mxu1 %v478_v29 }
  0x3b   :  { %455 = vmatprep.subr.bf16.mxu0 %v454_v32  ;;  %483 = vmatprep.subr.bf16.mxu1 %v482_v35  ;;  %p559_p6 = pnand %p558_p5, %p552_p2 }
  0x3e   :  { %457 = vmatpush3.bf16.msra.mxu0 %v454_v32  ;;  %485 = vmatpush3.bf16.msra.mxu1 %v482_v35 }
  0x3f   :  { %459 = vmatprep.subr.bf16.mxu0 %v458_v38  ;;  %487 = vmatprep.subr.bf16.mxu1 %v486_v41 }
  0x42   :  { %461 = vmatpush3.bf16.msra.mxu0 %v458_v38  ;;  %489 = vmatpush3.bf16.msra.mxu1 %v486_v41 }
  0x43   :  { %463 = vmatprep.subr.bf16.mxu0 %v462_v44  ;;  %491 = vmatprep.subr.bf16.mxu1 %v490_v45 }
  0x46   :  { %465 = vmatpush3.bf16.msra.mxu0 %v462_v44  ;;  %493 = vmatpush3.bf16.msra.mxu1 %v490_v45 }
  0x47   :  { %495 = vmatprep.subr.bf16.mxu1 %v494_v49 }
  0x49   :  { %397 = vmatmul.mubr.f32.vlgmr.msra.gmra.mrb[0].mxu0 %v56_v46 }
  0x4a   :  { %497 = vmatpush3.bf16.msra.mxu1 %v494_v49 }
 0x11c   :  { %v398_v51 = vpop.f32.mrb[0].mxu0 }
 0x11d   :  { %v152_v52 = vadd.f32 %v398_v51, %v324_v50  ;;  %v146_v53 = vpop.f32.mrb[1].mxu0 }
 0x11e   :  { %v147_v54 = vadd.f32 %v324_v50, %v146_v53 }
 0x11f   :  { %v156_v56 = vmax.f32 %v152_v52, 0.0 }
 0x120   :  { %v155_v55 = vmax.f32 %v147_v54, 0.0 }
 0x122   :  { %431 = vmatprep.mubr.f32.mxu1 %v155_v55 }
 0x123   :  { %432 = vmatmul.mubr.f32.vlgmr.msra.gmra.mrb[0].mxu1 %v156_v56 }
 0x1f6   :  { %v433_v60 = vpop.f32.mrb[0].mxu1 }
 0x1f7   :  { %v246_v61 = vpop.f32.mrb[1].mxu1  ;;  %v252_v63 = vadd.f32 %v433_v60, %v325_v59 }
 0x1f8   :  { %v247_v62 = vadd.f32 %v325_v59, %v246_v61 }
 0x1f9   :  { %v261_v1 = vsel %vm259_vm0, %v252_v63, 0.0 }
 0x1fa   :  { %v260_v0 = vsel %vm259_vm0, %v247_v62, 0.0 }
 0x1fb   :  { %262 = vadd.xlane.f32.xlu0 %v260_v0 }
 0x1ff   :  { %264 = vadd.xlane.f32.xlu0 %v261_v1 }
 0x288   :  { %v263_v2 = vpop.xlane.xlu0 %262 }
 0x289   :  { %v266_v3 = vmul.f32 0.03125, %v263_v2 }
 0x28b   :  { %v268_v4 = vsub.f32 %v260_v0, %v266_v3 }
 0x28c   :  { %v265_v5 = vpop.xlane.xlu0 %264 }
 0x28d   :  { %v267_v6 = vmul.f32 0.03125, %v265_v5  ;;  %v270_v7 = vsel %vm259_vm0, %v268_v4, 0.0 }
 0x28e   :  { %v272_v8 = vmul.f32 %v270_v7, %v270_v7 }
 0x28f   :  { %v269_v9 = vsub.f32 %v261_v1, %v267_v6 }
 0x290   :  { %274 = vadd.xlane.f32.xlu1 %v272_v8 }
 0x291   :  { %v271_v10 = vsel %vm259_vm0, %v269_v9, 0.0 }
 0x292   :  { %v273_v12 = vmul.f32 %v271_v10, %v271_v10 }
 0x294   :  { %276 = vadd.xlane.f32.xlu1 %v273_v12 }
 0x31d   :  { %v275_v13 = vpop.xlane.xlu1 %274 }
 0x31e   :  { %v278_v14 = vmul.f32 0.03125, %v275_v13 }
 0x320   :  { %v280_v15 = vadd.f32 1e-05, %v278_v14 }
 0x321   :  { %v277_v16 = vpop.xlane.xlu1 %276 }
 0x322   :  { %503 = vrsqrt.f32 %v280_v15  ;;  %v279_v17 = vmul.f32 0.03125, %v277_v16 }
 0x324   :  { %v281_v18 = vadd.f32 1e-05, %v279_v17 }
 0x326   :  { %505 = vrsqrt.f32 %v281_v18 }
 0x32c   :  { %v504_v19 = vpop.eup %503 }
 0x32d   :  { %v284_v21 = vmul.f32 %v504_v19, %v270_v7 }
 0x32f   :  { %v292_v22 = vmul.f32 %v326_v20, %v284_v21 }
 0x330   :  { %v506_v23 = vpop.eup %505 }
 0x331   :  { %v285_v25 = vmul.f32 %v506_v23, %v271_v10  ;;  %v294_v26 = vadd.f32 %v292_v22, %v657_v11 }
 0x333   :  { %v293_v27 = vmul.f32 %v326_v20, %v285_v25  ;;  %v302_v28 = vadd.f32 %v327_v24, %v294_v26 }
 0x335   :  { %v295_v29 = vadd.f32 %v293_v27, %v56_v46  ;;  %304 = vst [vmem:[#allocation7] sm:$0xff] %v302_v28 }
 0x337   :  { %v303_v30 = vadd.f32 %v327_v24, %v295_v29 }
 0x339   :  { %305 = vst [vmem:[#allocation7 + $0x8] sm:$0xff] %v303_v30 }
 0x33a   :  { %562 = shalt.err (!%p559_p6)
}
 0x33b   :  { %s563_s16 = scalar_lea.hbm %s702_s7, 256 }
 0x33c   :  { %p564_p7 = scmp.ne.s32.totalorder %s702_s7, %s563_s16  ;;  %p567_p8 = scmp.lt.u32.totalorder %s563_s16, %s702_s7 }
 0x33e   :  { %p569_p9 = pnand %p567_p8, %p564_p7 }
 0x340   :  { %572 = shalt.err (!%p569_p9)
}
 0x341   :  { %317 = dma.vmem_to_hbm [thread:$0]  %s312_s14, 256, %s702_s7, [#allocation4], %s580_s11, %s580_s11, %s581_s12  }
 0x342   :  { %577 = dma.done.wait [#allocation4], 256  }
 0x343   :  { %578 = vsyncadd [#allocation4], 4294967040 }
 0x344   :  { %321 = vsyncpa [#allocation3], 1 }
 0x345   :  { %322 = vsyncpa [#allocation6], 1 }
 0x346   :  { %323 = vsyncpa [#allocation4], 1 }

</bundles_post_ra>
